<compile_context>
chip_gen: v6e
topology: v6e:2x2x1
jax: 0.10.0
libtpu: 0.0.40
codegen_flags: <defaults>
</compile_context>

<pallas_src>
import functools

import jax
import jax.numpy as jnp
from jax.experimental import pallas as pl
from jax.experimental.pallas import tpu as pltpu


def _cdiv(a, b):
    return -(-a // b)


def _round_up(a, m):
    return _cdiv(a, m) * m


def _fused_linear_softmax_kernel(x_ref, w_ref, b_ref, o_ref):
    # Fused Linear: (TILE_B, D_IN) @ (D_IN, OUT) + bias.
    # Cast the x tile to the weight dtype (bf16 fast path -> native MXU),
    # accumulate in f32.
    logits = jnp.dot(x_ref[...].astype(w_ref.dtype), w_ref[...],
                     preferred_element_type=jnp.float32) + b_ref[...]
    # Numerically stable softmax over the feature axis, entirely in f32.
    m = jnp.max(logits, axis=1, keepdims=True)
    e = jnp.exp(logits - m)
    denom = jnp.sum(e, axis=1, keepdims=True)
    # Exact divide: rows sum to 1 to f32 rounding (the previous approx EUP
    # reciprocal broke the row-sum check under interpretation).
    o_ref[...] = (e / denom).astype(o_ref.dtype)


def prepare_params(w1, b1, w2, b2, *, compute_dtype=jnp.bfloat16):
    """One-time fusion of the two eval-mode Linears (call at init, not per step).

    Returns:
      w_fused: (D_IN, OUT) in `compute_dtype` (bf16 default -> native MXU path).
      b_fused: (1, OUT) float32 (added post-MXU; softmax math stays f32).
    """
    w1 = jnp.asarray(w1, jnp.float32)
    w2 = jnp.asarray(w2, jnp.float32)
    b1 = jnp.asarray(b1, jnp.float32).reshape(1, -1)
    b2 = jnp.asarray(b2, jnp.float32).reshape(1, -1)
    w_fused = jnp.dot(w1, w2, precision="highest").astype(compute_dtype)
    b_fused = (jnp.dot(b1, w2, precision="highest") + b2).astype(jnp.float32)
    return w_fused, b_fused


def _choose_tile_b(batch, max_tile_b):
    # Balanced, multiple-of-8 batch tiles: padding waste stays < 8 rows/tile.
    # For large batches force >= 2 grid steps so v7x's 2 TensorCores both get
    # a share of the "parallel" batch axis (v5e/v6e: harmless).
    n_tiles = max(_cdiv(batch, max_tile_b), 1)
    if batch >= 1024:
        n_tiles = max(n_tiles, 2)
    return max(_round_up(_cdiv(batch, n_tiles), 8), 8)


@functools.partial(jax.jit, static_argnames=("max_tile_b", "out_dtype"))
def model_forward(x, w_fused, b_fused, *, max_tile_b=2048, out_dtype=None):
    """probs = softmax(x @ w_fused + b_fused, axis=1), tiled over the batch."""
    batch, d_in = x.shape
    out_nodes = w_fused.shape[1]
    out_dtype = x.dtype if out_dtype is None else jnp.dtype(out_dtype)

    tile_b = _choose_tile_b(batch, max_tile_b)
    b_padded = _round_up(batch, tile_b)
    # Keep x in the caller's dtype (no forced f32 copy).  Under jit the pad
    # fuses with the dispatch instead of costing an extra HBM round trip.
    x_p = jnp.pad(x, ((0, b_padded - batch), (0, 0))) if b_padded != batch else x

    grid = (b_padded // tile_b,)
    out = pl.pallas_call(
        _fused_linear_softmax_kernel,
        out_shape=jax.ShapeDtypeStruct((b_padded, out_nodes), out_dtype),
        grid=grid,
        in_specs=[
            pl.BlockSpec((tile_b, d_in), lambda i: (i, 0)),      # x batch tile
            pl.BlockSpec((d_in, out_nodes), lambda i: (0, 0)),   # fused W (VMEM resident)
            pl.BlockSpec((1, out_nodes), lambda i: (0, 0)),      # fused bias
        ],
        # True-width (OUT) output block: legal (minor dim == full array dim)
        # and writes 8x fewer HBM bytes than a 128-lane padded layout.
        out_specs=pl.BlockSpec((tile_b, out_nodes), lambda i: (i, 0)),
        compiler_params=pltpu.CompilerParams(
            dimension_semantics=("parallel",)),
    )(x_p, w_fused, b_fused)

    return out[:batch] if b_padded != batch else out


if __name__ == "__main__":
    B, D_IN, HIDDEN, OUT = 8, 32, 10, 16

    key = jax.random.PRNGKey(0)
    kx, k1, k2, k3, k4 = jax.random.split(key, 5)

    x = jax.random.normal(kx, (B, D_IN), dtype=jnp.float32)
    w1 = jax.random.normal(k1, (D_IN, HIDDEN), dtype=jnp.float32) * 0.1
    b1 = jax.random.normal(k2, (1, HIDDEN), dtype=jnp.float32) * 0.01
    w2 = jax.random.normal(k3, (HIDDEN, OUT), dtype=jnp.float32) * 0.1
    b2 = jax.random.normal(k4, (1, OUT), dtype=jnp.float32) * 0.01

    # Plain-XLA reference (eval-mode dropout == identity).
    h_ref = jnp.dot(x, w1, precision="highest") + b1
    ref = jax.nn.softmax(jnp.dot(h_ref, w2, precision="highest") + b2, axis=1)

    # --- exact f32 path: kernel math must match the reference tightly -------
    w_f32, b_f32 = prepare_params(w1, b1, w2, b2, compute_dtype=jnp.float32)
    out_f32 = model_forward(x, w_f32, b_f32)
    jax.block_until_ready(out_f32)
    assert out_f32.shape == (B, OUT)
    assert jnp.allclose(jnp.sum(out_f32, axis=1), 1.0, atol=1e-5)
    assert jnp.allclose(out_f32, ref, atol=2e-3, rtol=2e-3)

    # --- default fast path: bf16 fused weight / bf16 MXU, f32 accumulation --
    w_bf16, b_bf16 = prepare_params(w1, b1, w2, b2)  # compute_dtype=bf16
    out_fast = model_forward(x, w_bf16, b_bf16)
    jax.block_until_ready(out_fast)
    assert out_fast.shape == (B, OUT)
    assert jnp.allclose(jnp.sum(out_fast, axis=1), 1.0, atol=1e-5)
    # bf16 operands carry ~2^-9 relative quantization -> loose tolerance.
    assert jnp.allclose(out_fast, ref, atol=5e-3, rtol=5e-3)

    print("KERNEL_OK")
</pallas_src>

<mosaic_0001>
module attributes {stable_mosaic.version = 11 : i64} {
  func.func @_fused_linear_softmax_kernel(%arg0: i32, %arg1: memref<8x32xf32, #tpu.memory_space<vmem>>, %arg2: memref<32x16xf32, #tpu.memory_space<vmem>>, %arg3: memref<1x16xf32, #tpu.memory_space<vmem>>, %arg4: memref<8x16xf32, #tpu.memory_space<vmem>>) attributes {dimension_semantics = [#tpu.dimension_semantics<parallel>], iteration_bounds = array<i64: 1>, scalar_prefetch = 0 : i64, scratch_operands = 0 : i64, tpu.core_type = #tpu.core_type<tc>, window_params = [{transform_indices = @transform_0, window_bounds = array<i64: 8, 32>}, {pipeline_mode = #tpu.pipeline_mode<synchronous>, transform_indices = @transform_1, window_bounds = array<i64: 32, 16>}, {pipeline_mode = #tpu.pipeline_mode<synchronous>, transform_indices = @transform_2, window_bounds = array<i64: 1, 16>}, {transform_indices = @transform_3, window_bounds = array<i64: 8, 16>}]} {
    %c0 = arith.constant 0 : index
    %c0_0 = arith.constant 0 : index
    %0 = vector.load %arg1[%c0, %c0_0] : memref<8x32xf32, #tpu.memory_space<vmem>>, vector<8x32xf32>
    %c0_1 = arith.constant 0 : index
    %c0_2 = arith.constant 0 : index
    %1 = vector.load %arg2[%c0_1, %c0_2] : memref<32x16xf32, #tpu.memory_space<vmem>>, vector<32x16xf32>
    %cst = arith.constant dense<0.000000e+00> : vector<8x16xf32>
    %2 = tpu.matmul %0, %1, %cst {dimension_numbers = #tpu.dot_dimension_numbers<[1], [0], [0], [1], [0, 0, 1, 1], [], []>} : vector<8x32xf32>, vector<32x16xf32>, vector<8x16xf32> -> vector<8x16xf32>
    %c0_3 = arith.constant 0 : index
    %c0_4 = arith.constant 0 : index
    %3 = vector.load %arg3[%c0_3, %c0_4] : memref<1x16xf32, #tpu.memory_space<vmem>>, vector<1x16xf32>
    %4 = vector.broadcast %3 : vector<1x16xf32> to vector<8x16xf32>
    %5 = arith.addf %2, %4 : vector<8x16xf32>
    %cst_5 = arith.constant dense<0xFF800000> : vector<8xf32>
    %6 = vector.multi_reduction <maximumf>, %5, %cst_5 [1] : vector<8x16xf32> to vector<8xf32>
    %7 = vector.shape_cast %6 : vector<8xf32> to vector<8x1xf32>
    %8 = vector.broadcast %7 : vector<8x1xf32> to vector<8x16xf32>
    %9 = arith.subf %5, %8 : vector<8x16xf32>
    %10 = math.exp %9 : vector<8x16xf32>
    %cst_6 = arith.constant dense<0.000000e+00> : vector<8xf32>
    %11 = vector.multi_reduction <add>, %10, %cst_6 [1] : vector<8x16xf32> to vector<8xf32>
    %12 = vector.shape_cast %11 : vector<8xf32> to vector<8x1xf32>
    %13 = vector.broadcast %12 : vector<8x1xf32> to vector<8x16xf32>
    %14 = arith.divf %10, %13 : vector<8x16xf32>
    %c0_7 = arith.constant 0 : index
    %c0_8 = arith.constant 0 : index
    %15 = vector.load %arg4[%c0_7, %c0_8] : memref<8x16xf32, #tpu.memory_space<vmem>>, vector<8x16xf32>
    tpu.vector_store %arg4[%c0_7, %c0_8], %14 {strides = array<i32>} : memref<8x16xf32, #tpu.memory_space<vmem>>, vector<8x16xf32>,
    return
  }
  func.func @transform_0(%arg0: i32) -> (i32, i32) {
    %c0_i32 = arith.constant 0 : i32
    %c0_i32_0 = arith.constant 0 : i32
    return %arg0, %c0_i32 : i32, i32
  }
  func.func @transform_1(%arg0: i32) -> (i32, i32) {
    %c0_i32 = arith.constant 0 : i32
    %c0_i32_0 = arith.constant 0 : i32
    %c0_i32_1 = arith.constant 0 : i32
    return %c0_i32, %c0_i32_0 : i32, i32
  }
  func.func @transform_2(%arg0: i32) -> (i32, i32) {
    %c0_i32 = arith.constant 0 : i32
    %c0_i32_0 = arith.constant 0 : i32
    %c0_i32_1 = arith.constant 0 : i32
    return %c0_i32, %c0_i32_0 : i32, i32
  }
  func.func @transform_3(%arg0: i32) -> (i32, i32) {
    %c0_i32 = arith.constant 0 : i32
    %c0_i32_0 = arith.constant 0 : i32
    return %arg0, %c0_i32 : i32, i32
  }
}

</mosaic_0001>

<bundles_post_ra>
// kernel: model_forward.1
= control target key start
LH: loop header
LB: loop body
LE: loop exit
PB: predicated region body
PF: predicated region fallthrough
CT: control target
= control target key end

     0   :  { %v175_v1 = vmov 0.0   ;;  %vm176_vm0 = vmmov 0   ;;  %s222_s0 = inlined_call_operand.vmem [shape: f32[8,32], index: 0, kind: input, shape index: {}]   ;;  %s223_s1 = inlined_call_operand.vmem [shape: f32[32,16], index: 1, kind: input, shape index: {}]   ;;  %s224_s2 = inlined_call_operand.vmem [shape: f32[1,16], index: 2, kind: input, shape index: {}]   ;;  %s225_s3 = inlined_call_operand.hbm [shape: f32[8,16], index: 3, kind: output, shape index: {}]  }
   0x1   :  { %v19_v0 = vld [vmem:[%s223_s1 + $0x18] sm:$0xff]  ;;  %135 = vmatprep.subr.mxu0 %v175_v1  ;;  %v18_v2 = vld [vmem:[%s223_s1 + $0x10] sm:$0xff]  ;;  %143 = vmatprep.mubr.msk.f32.mxu0 %vm176_vm0, %v175_v1 }
   0x2   :  { %136 = vmatpush3.msra.mxu0 %v19_v0 }
   0x3   :  { %8 = vsyncpa [#allocation3], 0  ;;  %137 = vmatprep.subr.mxu0 %v175_v1  ;;  %v17_v3 = vld [vmem:[%s223_s1 + $0x8] sm:$0xff]  ;;  %v16_v4 = vld [vmem:[%s223_s1] sm:$0xff]  ;;  %vm27_vm1 = vcmask 261120   ;;  %vm101_vm2 = vcmask 130048  }
   0x4   :  { %138 = vmatpush3.msra.mxu0 %v18_v2  ;;  %v15_v5 = vld [vmem:[%s222_s0] sm:$0xff]  ;;  %s177_s0 = smov [#allocation2]  }
   0x5   :  { %139 = vmatprep.subr.mxu0 %v175_v1  ;;  %v128_v6 = vld [vmem:[%s224_s2] ss:$0 sm:$0xff]  ;;  %s120_s1 = sshll.u32 %s177_s0, 4  ;;  %s121_s1 = int_to_ptr.vmem [resolvable:$true] %s120_s1 }
   0x6   :  { %140 = vmatpush3.msra.mxu0 %v17_v3  ;;  %s153_s2 = scalar_lea.vmem %s121_s1, 128  ;;  %p158_p1 = scmp.lt.s32.totalorder %s121_s1, %s121_s1 }
   0x7   :  { %141 = vmatprep.subr.mxu0 %v175_v1  ;;  %p154_p0 = scmp.ne.s32.totalorder %s121_s1, %s153_s2  ;;  %p159_p2 = scmp.lt.s32.totalorder %s153_s2, %s153_s2 }
   0x8   :  { %142 = vmatpush3.msra.mxu0 %v16_v4 }
   0x9   :  { %144 = vmatmul.mubr.msk.f32.vlgmr.msra.gmra.mxu0 %vm27_vm1, %v15_v5  ;;  %p160_p3 = por %p159_p2, %p158_p1 }
   0xb   :  { %p161_p4 = pnand %p160_p3, %p154_p0 }
  0xc9   :  { %v97_v7 = vpop.f32.mrf.mxu0 }
  0xca   :  { %v98_v8 = vadd.f32 %v128_v6, %v97_v7 }
  0xcb   :  { %v145_v9 = vpop.f32.mrf.mxu0 }
  0xcc   :  { %v102_v10 = vsel %vm101_vm2, %v98_v8, -inf }
  0xcd   :  { %103 = vmax.xlane.f32.xlu0 %v102_v10 }
 0x156   :  { %v104_v11 = vpop.xlane.xlu0 %103 }
 0x157   :  { %v105_v12 = vsub.f32 %v98_v8, %v104_v11 }
 0x159   :  { %v106_v13 = vmul.f32 1.442695, %v105_v12 }
 0x15b   :  { %149 = vpow2.f32 %v106_v13 }
 0x168   :  { %v150_v14 = vpop.eup %149 }
 0x169   :  { %v108_v15 = vsel %vm101_vm2, %v150_v14, 0.0 }
 0x16a   :  { %109 = vadd.xlane.f32.xlu0 %v108_v15 }
 0x1f3   :  { %v110_v16 = vpop.xlane.xlu0 %109 }
 0x1f4   :  { %151 = vrcp.f32 %v110_v16 }
 0x201   :  { %v152_v17 = vpop.eup %151 }
 0x202   :  { %v112_v18 = vmul.f32 %v152_v17, %v150_v14 }
 0x204   :  { %113 = vst.msk [vmem:[#allocation2] sm:$0xff] %vm101_vm2, %v112_v18 }
 0x205   :  { %164 = shalt.err (!%p161_p4)
}
 0x206   :  { %123 = dma.vmem_to_hbm [thread:$0]  %s121_s1, 128, %s225_s3, [#allocation3]  }
 0x207   :  { %173 = dma.done.wait [#allocation3], 128  }
 0x208   :  { %174 = vsyncadd [#allocation3], 4294967168 }
 0x209   :  { %127 = vsyncpa [#allocation3], 1 }

</bundles_post_ra>
